<compile_context>
chip_gen: v6e
topology: v6e:2x2x1
jax: 0.10.0
libtpu: 0.0.40
codegen_flags: <defaults>
</compile_context>

<pallas_src>
import math

import jax
import jax.numpy as jnp
from jax.experimental import pallas as pl
from jax.experimental.pallas import tpu as pltpu


_VMEM_LIMIT_BYTES = 48 * 1024 * 1024        # < 64 MiB physical on v7x, ample on v5e/v6e
_RESIDENT_H_BUDGET = 16 * 1024 * 1024       # budget for (possibly double-buffered) resident H
_STAGE1_TILE_BUDGET = 24 * 1024 * 1024      # per-call VMEM budget for stage-1 tiles


def _round_up(x, m):
    return ((x + m - 1) // m) * m


def _pad2(x, rows, cols, dtype):
    x = x.astype(dtype)
    pr, pc = rows - x.shape[0], cols - x.shape[1]
    if pr or pc:
        x = jnp.pad(x, ((0, pr), (0, pc)))
    return x


def _pick_stage1_tile(n_src_pad, tk, row_bytes):
    """Largest multiple of tk that divides n_src_pad, fits the VMEM budget, <= 4096 rows."""
    cap = max(tk, min(4096, _STAGE1_TILE_BUDGET // max(row_bytes, 1)))
    num_k = n_src_pad // tk
    best = 1
    for m in range(1, num_k + 1):
        if num_k % m == 0 and tk * m <= cap:
            best = m
    return tk * best


# ---------------- Stage 1: H = (feat @ W) * cj ----------------
def _feat_transform_kernel(feat_ref, w_ref, cj_ref, h_ref):
    # f32 x f32 -> f32 on the MXU (stage 1 is cheap; keeps parity with the f32 module).
    h = jnp.dot(feat_ref[...], w_ref[...], preferred_element_type=jnp.float32)
    # Per-source-node scaling by cj.  Single bf16 rounding happens here.
    # TODO(synk): training-mode dropout on cj (pltpu.prng_*) not implemented; eval mode only.
    h_ref[...] = (h * cj_ref[...]).astype(h_ref.dtype)


# ---------------- Stage 2: out = (adj @ H) * ci ----------------
def _make_aggregate_kernel(resident_h):
    def kernel(adj_ref, h_ref, ci_ref, out_ref, acc_ref):
        k = pl.program_id(1)

        @pl.when(k == 0)
        def _init():
            acc_ref[...] = jnp.zeros_like(acc_ref)

        # int8 adjacency is cast to bf16 on the VPU (hidden under the adj DMA);
        # 0/1/small-int entries are exact in bf16.  Accumulation stays f32.
        adj_bf16 = adj_ref[...].astype(jnp.bfloat16)
        h_blk = h_ref[k] if resident_h else h_ref[...]
        acc_ref[...] += jnp.dot(adj_bf16, h_blk, preferred_element_type=jnp.float32)

        @pl.when(k == pl.num_programs(1) - 1)
        def _finalize():
            # ci scale applied once per output tile, at finalize only.
            out_ref[...] = (acc_ref[...] * ci_ref[...]).astype(out_ref.dtype)

    return kernel


def gcmc_graph_conv(adj, feat, weight, cj, ci, *, tm=1024, tk=2048, h_resident=None):
    """adj: (N_dst, N_src) 0/1 (small-int) entries, feat: (N_src, F_in),
    weight: (F_in, F_out), cj: (N_src, 1), ci: (N_dst, 1)  ->  (N_dst, F_out) float32."""
    n_dst, n_src = adj.shape
    f_in, f_out = weight.shape

    # Lane-dense padding of the feature dims (zero padding is exact).
    f_in_pad = _round_up(f_in, 128)
    f_pad = _round_up(f_out, 128)

    # --- tile sizing ---------------------------------------------------------
    # TM 32-aligned (native int8 sublane packing); keep >= 2 row blocks on big
    # problems so both v7x TensorCores get work on the parallel axis.
    tm_cap = _round_up(n_dst, 32)
    tm = max(32, min(_round_up(tm, 32), tm_cap))
    if tm == tm_cap and tm_cap > 512:
        tm = _round_up(-(-tm_cap // 2), 32)
    n_dst_pad = _round_up(n_dst, tm)

    tk = max(128, min(_round_up(tk, 128), _round_up(n_src, 128)))
    n_src_pad = _round_up(n_src, tk)
    num_k = n_src_pad // tk

    # Keep H fully VMEM-resident in stage 2 when it fits -> read from HBM once.
    h_bytes = n_src_pad * f_pad * 2  # bf16
    if h_resident is None:
        h_resident = (num_k > 1) and (2 * h_bytes <= _RESIDENT_H_BUDGET)

    # --- operand staging -----------------------------------------------------
    # int8 adjacency (exact for 0/1 edge indicators); f32 feat/W/scales; bf16 H.
    adj_p = _pad2(adj, n_dst_pad, n_src_pad, jnp.int8)
    feat_p = _pad2(feat, n_src_pad, f_in_pad, jnp.float32)
    w_p = _pad2(weight, f_in_pad, f_pad, jnp.float32)
    cj_p = _pad2(cj, n_src_pad, 1, jnp.float32)
    ci_p = _pad2(ci, n_dst_pad, 1, jnp.float32)

    # ---- Stage 1: H = (feat @ W) * cj, computed once, large source tiles -----
    row_bytes = 2 * (f_in_pad * 4 + f_pad * 2)  # double-buffered feat + H per row
    tk1 = _pick_stage1_tile(n_src_pad, tk, row_bytes)

    h = pl.pallas_call(
        _feat_transform_kernel,
        out_shape=jax.ShapeDtypeStruct((n_src_pad, f_pad), jnp.bfloat16),
        grid_spec=pltpu.PrefetchScalarGridSpec(
            num_scalar_prefetch=0,
            grid=(n_src_pad // tk1,),
            in_specs=[
                pl.BlockSpec((tk1, f_in_pad), lambda s: (s, 0)),
                pl.BlockSpec((f_in_pad, f_pad), lambda s: (0, 0)),   # W resident
                pl.BlockSpec((tk1, 1), lambda s: (s, 0)),
            ],
            out_specs=pl.BlockSpec((tk1, f_pad), lambda s: (s, 0)),
        ),
        compiler_params=pltpu.CompilerParams(
            dimension_semantics=("parallel",),
            vmem_limit_bytes=_VMEM_LIMIT_BYTES,
        ),
    )(feat_p, w_p, cj_p)

    # ---- Stage 2: out = (adj @ H) * ci, reduction axis last, f32 accumulator -
    if h_resident:
        h_in = h.reshape(num_k, tk, f_pad)                           # free row-major reshape
        h_spec = pl.BlockSpec((num_k, tk, f_pad), lambda i, k: (0, 0, 0))  # VMEM-resident H
    else:
        h_in = h
        h_spec = pl.BlockSpec((tk, f_pad), lambda i, k: (k, 0))

    out = pl.pallas_call(
        _make_aggregate_kernel(h_resident),
        out_shape=jax.ShapeDtypeStruct((n_dst_pad, f_pad), jnp.float32),
        grid_spec=pltpu.PrefetchScalarGridSpec(
            num_scalar_prefetch=0,
            grid=(n_dst_pad // tm, num_k),
            in_specs=[
                pl.BlockSpec((tm, tk), lambda i, k: (i, k)),         # int8 adjacency tile
                h_spec,
                pl.BlockSpec((tm, 1), lambda i, k: (i, 0)),
            ],
            out_specs=pl.BlockSpec((tm, f_pad), lambda i, k: (i, 0)),
            scratch_shapes=[pltpu.VMEM((tm, f_pad), jnp.float32)],
        ),
        compiler_params=pltpu.CompilerParams(
            dimension_semantics=("parallel", "arbitrary"),
            vmem_limit_bytes=_VMEM_LIMIT_BYTES,
        ),
    )(adj_p, h_in, ci_p)

    return out[:n_dst, :f_out]


if __name__ == "__main__":
    # Deliberately non-tile-aligned small shapes so padding, multi-tile accumulation,
    # resident-H and tiled-H code paths are all exercised.
    N_SRC, N_DST = 400, 272
    IN_FEATS, OUT_FEATS = 32, 16

    key = jax.random.PRNGKey(0)
    k_feat, k_w, k_adj, k_cj, k_ci = jax.random.split(key, 5)

    feat = jax.random.normal(k_feat, (N_SRC, IN_FEATS), dtype=jnp.float32)

    # Xavier-uniform init for the (in_feats, out_feats) weight, as in reset_parameters().
    bound = math.sqrt(6.0 / (IN_FEATS + OUT_FEATS))
    weight = jax.random.uniform(
        k_w, (IN_FEATS, OUT_FEATS), minval=-bound, maxval=bound, dtype=jnp.float32
    )

    # Dense adjacency (N_dst, N_src): A[i, j] = 1 iff edge j -> i. ~20% density.
    adj = (jax.random.uniform(k_adj, (N_DST, N_SRC)) < 0.2).astype(jnp.float32)

    # Normalization coefficients cj (source) and ci (destination).
    cj = jax.random.uniform(k_cj, (N_SRC, 1), minval=0.1, maxval=1.0, dtype=jnp.float32)
    ci = jax.random.uniform(k_ci, (N_DST, 1), minval=0.1, maxval=1.0, dtype=jnp.float32)

    # Reference with the kernel's single bf16 rounding of H; adjacency is exact 0/1,
    # all accumulation f32.
    h_ref = ((feat @ weight) * cj).astype(jnp.bfloat16).astype(jnp.float32)
    ref = (adj @ h_ref) * ci

    # (a) multi-tile grid (3 x 4) with auto VMEM-resident H,
    # (b) same grid with the tiled-H fallback forced,
    # (c) default large tiles (clamped; single reduction step).
    outs = [
        gcmc_graph_conv(adj, feat, weight, cj, ci, tm=128, tk=128),
        gcmc_graph_conv(adj, feat, weight, cj, ci, tm=128, tk=128, h_resident=False),
        gcmc_graph_conv(adj, feat, weight, cj, ci),
    ]
    outs = jax.block_until_ready(outs)

    for out in outs:
        assert out.shape == (N_DST, OUT_FEATS)
        assert jnp.allclose(out, ref, atol=2e-2, rtol=2e-2), "mismatch vs reference"

    print("KERNEL_OK")
</pallas_src>

<mosaic_0001>
module attributes {stable_mosaic.version = 11 : i64} {
  func.func @_feat_transform_kernel(%arg0: i32, %arg1: memref<512x128xf32, #tpu.memory_space<vmem>>, %arg2: memref<128x128xf32, #tpu.memory_space<vmem>>, %arg3: memref<512x1xf32, #tpu.memory_space<vmem>>, %arg4: memref<512x128xbf16, #tpu.memory_space<vmem>>) attributes {dimension_semantics = [#tpu.dimension_semantics<parallel>], iteration_bounds = array<i64: 1>, scalar_prefetch = 0 : i64, scratch_operands = 0 : i64, tpu.core_type = #tpu.core_type<tc>, window_params = [{transform_indices = @transform_0, window_bounds = array<i64: 512, 128>}, {pipeline_mode = #tpu.pipeline_mode<synchronous>, transform_indices = @transform_1, window_bounds = array<i64: 128, 128>}, {transform_indices = @transform_2, window_bounds = array<i64: 512, 1>}, {transform_indices = @transform_3, window_bounds = array<i64: 512, 128>}]} {
    %c0 = arith.constant 0 : index
    %c0_0 = arith.constant 0 : index
    %0 = vector.load %arg1[%c0, %c0_0] : memref<512x128xf32, #tpu.memory_space<vmem>>, vector<512x128xf32>
    %c0_1 = arith.constant 0 : index
    %c0_2 = arith.constant 0 : index
    %1 = vector.load %arg2[%c0_1, %c0_2] : memref<128x128xf32, #tpu.memory_space<vmem>>, vector<128x128xf32>
    %cst = arith.constant dense<0.000000e+00> : vector<512x128xf32>
    %2 = tpu.matmul %0, %1, %cst {dimension_numbers = #tpu.dot_dimension_numbers<[1], [0], [0], [1], [0, 0, 1, 1], [], []>} : vector<512x128xf32>, vector<128x128xf32>, vector<512x128xf32> -> vector<512x128xf32>
    %c0_3 = arith.constant 0 : index
    %c0_4 = arith.constant 0 : index
    %3 = vector.load %arg3[%c0_3, %c0_4] : memref<512x1xf32, #tpu.memory_space<vmem>>, vector<512x1xf32>
    %4 = vector.broadcast %3 : vector<512x1xf32> to vector<512x128xf32>
    %5 = arith.mulf %2, %4 : vector<512x128xf32>
    %6 = arith.truncf %5 : vector<512x128xf32> to vector<512x128xbf16>
    %c0_5 = arith.constant 0 : index
    %c0_6 = arith.constant 0 : index
    %7 = vector.load %arg4[%c0_5, %c0_6] : memref<512x128xbf16, #tpu.memory_space<vmem>>, vector<512x128xbf16>
    tpu.vector_store %arg4[%c0_5, %c0_6], %6 {strides = array<i32>} : memref<512x128xbf16, #tpu.memory_space<vmem>>, vector<512x128xbf16>,
    return
  }
  func.func @transform_0(%arg0: i32) -> (i32, i32) {
    %c0_i32 = arith.constant 0 : i32
    %c0_i32_0 = arith.constant 0 : i32
    return %arg0, %c0_i32 : i32, i32
  }
  func.func @transform_1(%arg0: i32) -> (i32, i32) {
    %c0_i32 = arith.constant 0 : i32
    %c0_i32_0 = arith.constant 0 : i32
    %c0_i32_1 = arith.constant 0 : i32
    return %c0_i32, %c0_i32_0 : i32, i32
  }
  func.func @transform_2(%arg0: i32) -> (i32, i32) {
    %c0_i32 = arith.constant 0 : i32
    %c0_i32_0 = arith.constant 0 : i32
    return %arg0, %c0_i32 : i32, i32
  }
  func.func @transform_3(%arg0: i32) -> (i32, i32) {
    %c0_i32 = arith.constant 0 : i32
    %c0_i32_0 = arith.constant 0 : i32
    return %arg0, %c0_i32 : i32, i32
  }
}

</mosaic_0001>

<bundles_post_ra>
// kernel: tpu_custom_call.1
= control target key start
LH: loop header
LB: loop body
LE: loop exit
PB: predicated region body
PF: predicated region fallthrough
CT: control target
= control target key end

     0   :  { %8 = vsyncpa [#allocation3], 0  ;;  %s2422_s0 = inlined_call_operand.vmem [shape: f32[512,128], index: 0, kind: input, shape index: {}]   ;;  %s2423_s1 = inlined_call_operand.hbm [shape: f32[128,128], index: 1, kind: input, shape index: {}]   ;;  %s2424_s2 = inlined_call_operand.vmem [shape: f32[512,1], index: 2, kind: input, shape index: {}]   ;;  %s2425_s3 = inlined_call_operand.hbm [shape: bf16[512,128], index: 3, kind: output, shape index: {}]  }
   0x1   :  { %9 = vsyncpa [#allocation4], 0  ;;  %s1891_s12 = smov [#allocation2]  }
   0x2   :  { %s17_s13 = sshll.u32 %s1891_s12, 4  ;;  %s18_s13 = int_to_ptr.vmem [resolvable:$true] %s17_s13 }
   0x3   :  { %s1855_s14 = scalar_lea.vmem %s18_s13, 2048  ;;  %p1860_p1 = scmp.lt.s32.totalorder %s18_s13, %s18_s13 }
   0x4   :  { %p1856_p0 = scmp.ne.s32.totalorder %s18_s13, %s1855_s14  ;;  %p1861_p2 = scmp.lt.s32.totalorder %s1855_s14, %s1855_s14 }
   0x6   :  { %p1862_p3 = por %p1861_p2, %p1860_p1 }
   0x8   :  { %p1863_p4 = pnand %p1862_p3, %p1856_p0 }
   0xa   :  { %1866 = shalt.err (!%p1863_p4)
}
   0xb   :  { %s1892_s15 = smov 128   ;;  %s1893_s16 = smov 8  }
   0xc   :  { %23 = dma.hbm_to_vmem [thread:$0]  %s2423_s1, 2048, %s18_s13, [#allocation3], %s1892_s15, %s1892_s15, %s1893_s16  }
   0xd   :  { %1887 = dma.done.wait [#allocation3], 2048  }
   0xe   :  { %1888 = vsyncadd [#allocation3], 4294965248  ;;  %v1894_v0 = vmov 0   ;;  %v496_v1 = vld [vmem:[%s2424_s2 + $0x10] sm:$0xff]  ;;  %v494_v2 = vld [vmem:[%s2424_s2] sm:$0xff] }
   0xf   :  { %1846 = vset.pattern.permute.xlu1 %v1894_v0  ;;  %1845 = vset.pattern.permute.xlu0 %v1894_v0  ;;  %v108_v3 = vld [vmem:[#allocation2 + $0x78] sm:$0xff]  ;;  %v107_v4 = vld [vmem:[#allocation2 + $0x70] sm:$0xff]  ;;  %v495_v6 = vld [vmem:[%s2424_s2 + $0x8] sm:$0xff] }
  0x10   :  { %570 = vperm.xlu1 %1846, %v496_v1   ;;  %560 = vperm.xlu0 %1845, %v494_v2   ;;  %v497_v5 = vld [vmem:[%s2424_s2 + $0x18] sm:$0xff]  ;;  %v106_v7 = vld [vmem:[#allocation2 + $0x68] sm:$0xff]  ;;  %v105_v8 = vld [vmem:[#allocation2 + $0x60] sm:$0xff] }
  0x11   :  { %1678 = vmatprep.subr.mxu0 %v108_v3  ;;  %1806 = vmatprep.subr.mxu1 %v108_v3  ;;  %v499_v9 = vld [vmem:[%s2424_s2 + $0x28] sm:$0xff]  ;;  %v498_v10 = vld [vmem:[%s2424_s2 + $0x20] sm:$0xff]  ;;  %v104_v11 = vld [vmem:[#allocation2 + $0x58] sm:$0xff] }
  0x12   :  { %1679 = vmatpush3.msra.mxu0 %v108_v3  ;;  %1822 = vmatpush3.msra.mxu1 %v108_v3  ;;  %v103_v12 = vld [vmem:[#allocation2 + $0x50] sm:$0xff]  ;;  %v501_v13 = vld [vmem:[%s2424_s2 + $0x38] sm:$0xff]  ;;  %v102_v15 = vld [vmem:[#allocation2 + $0x48] sm:$0xff] }
  0x13   :  { %1680 = vmatprep.subr.mxu0 %v107_v4  ;;  %1807 = vmatprep.subr.mxu1 %v107_v4  ;;  %v500_v14 = vld [vmem:[%s2424_s2 + $0x30] sm:$0xff]  ;;  %v101_v16 = vld [vmem:[#allocation2 + $0x40] sm:$0xff]  ;;  %v503_v17 = vld [vmem:[%s2424_s2 + $0x48] sm:$0xff] }
  0x14   :  { %1681 = vmatpush3.msra.mxu0 %v107_v4  ;;  %1823 = vmatpush3.msra.mxu1 %v107_v4  ;;  %v502_v18 = vld [vmem:[%s2424_s2 + $0x40] sm:$0xff]  ;;  %v100_v19 = vld [vmem:[#allocation2 + $0x38] sm:$0xff]  ;;  %v99_v20 = vld [vmem:[#allocation2 + $0x30] sm:$0xff] }
  0x15   :  { %575 = vperm.xlu1 %1846, %v497_v5   ;;  %565 = vperm.xlu0 %1845, %v495_v6   ;;  %v505_v21 = vld [vmem:[%s2424_s2 + $0x58] sm:$0xff]  ;;  %v504_v22 = vld [vmem:[%s2424_s2 + $0x50] sm:$0xff]  ;;  %v98_v23 = vld [vmem:[#allocation2 + $0x28] sm:$0xff] }
  0x16   :  { %1682 = vmatprep.subr.mxu0 %v106_v7  ;;  %1808 = vmatprep.subr.mxu1 %v106_v7  ;;  %v97_v24 = vld [vmem:[#allocation2 + $0x20] sm:$0xff]  ;;  %v507_v25 = vld [vmem:[%s2424_s2 + $0x68] sm:$0xff]  ;;  %v96_v27 = vld [vmem:[#allocation2 + $0x18] sm:$0xff] }
  0x17   :  { %1683 = vmatpush3.msra.mxu0 %v106_v7  ;;  %1824 = vmatpush3.msra.mxu1 %v106_v7  ;;  %v506_v26 = vld [vmem:[%s2424_s2 + $0x60] sm:$0xff]  ;;  %v95_v28 = vld [vmem:[#allocation2 + $0x10] sm:$0xff]  ;;  %v509_v29 = vld [vmem:[%s2424_s2 + $0x78] sm:$0xff] }
  0x18   :  { %1684 = vmatprep.subr.mxu0 %v105_v8  ;;  %1809 = vmatprep.subr.mxu1 %v105_v8  ;;  %v508_v30 = vld [vmem:[%s2424_s2 + $0x70] sm:$0xff]  ;;  %v94_v31 = vld [vmem:[#allocation2 + $0x8] sm:$0xff]  ;;  %v93_v32 = vld [vmem:[#allocation2] sm:$0xff] }
  0x19   :  { %1685 = vmatpush3.msra.mxu0 %v105_v8  ;;  %1825 = vmatpush3.msra.mxu1 %v105_v8  ;;  %v29_v33 = vld [vmem:[%s2422_s0] sm:$0xff]  ;;  %v511_v35 = vld [vmem:[%s2424_s2 + $0x88] sm:$0xff]  ;;  %v31_v39 = vld [vmem:[%s2422_s0 + $0x10] sm:$0xff] }
  0x1a   :  { %585 = vperm.xlu1 %1846, %v499_v9   ;;  %580 = vperm.xlu0 %1845, %v498_v10   ;;  %v61_v34 = vld [vmem:[%s2422_s0 + $0x100] sm:$0xff]  ;;  %v30_v37 = vld [vmem:[%s2422_s0 + $0x8] sm:$0xff]  ;;  %v63_v40 = vld [vmem:[%s2422_s0 + $0x110] sm:$0xff] }
  0x1b   :  { %1686 = vmatprep.subr.mxu0 %v104_v11  ;;  %1810 = vmatprep.subr.mxu1 %v104_v11  ;;  %v510_v36 = vld [vmem:[%s2424_s2 + $0x80] sm:$0xff]  ;;  %v62_v38 = vld [vmem:[%s2422_s0 + $0x108] sm:$0xff]  ;;  %v513_v41 = vld [vmem:[%s2424_s2 + $0x98] sm:$0xff] }
  0x1c   :  { %1687 = vmatpush3.msra.mxu0 %v104_v11  ;;  %1826 = vmatpush3.msra.mxu1 %v104_v11  ;;  %v512_v42 = vld [vmem:[%s2424_s2 + $0x90] sm:$0xff]  ;;  %v32_v43 = vld [vmem:[%s2422_s0 + $0x18] sm:$0xff]  ;;  %v33_v45 = vld [vmem:[%s2422_s0 + $0x20] sm:$0xff] }
  0x1d   :  { %1688 = vmatprep.subr.mxu0 %v103_v12  ;;  %1811 = vmatprep.subr.mxu1 %v103_v12  ;;  %v64_v44 = vld [vmem:[%s2422_s0 + $0x118] sm:$0xff]  ;;  %v65_v46 = vld [vmem:[%s2422_s0 + $0x120] sm:$0xff]  ;;  %v515_v47 = vld [vmem:[%s2424_s2 + $0xa8] sm:$0xff] }
  0x1e   :  { %1689 = vmatpush3.msra.mxu0 %v103_v12  ;;  %1827 = vmatpush3.msra.mxu1 %v103_v12  ;;  %v514_v48 = vld [vmem:[%s2424_s2 + $0xa0] sm:$0xff]  ;;  %v34_v49 = vld [vmem:[%s2422_s0 + $0x28] sm:$0xff]  ;;  %v35_v51 = vld [vmem:[%s2422_s0 + $0x30] sm:$0xff] }
  0x1f   :  { %595 = vperm.xlu1 %1846, %v501_v13   ;;  %590 = vperm.xlu0 %1845, %v500_v14   ;;  %v66_v50 = vld [vmem:[%s2422_s0 + $0x128] sm:$0xff]  ;;  %v67_v52 = vld [vmem:[%s2422_s0 + $0x130] sm:$0xff]  ;;  %v517_v53 = vld [vmem:[%s2424_s2 + $0xb8] sm:$0xff] }
  0x20   :  { %1690 = vmatprep.subr.mxu0 %v102_v15  ;;  %1812 = vmatprep.subr.mxu1 %v102_v15  ;;  %v516_v54 = vld [vmem:[%s2424_s2 + $0xb0] sm:$0xff]  ;;  %v36_v55 = vld [vmem:[%s2422_s0 + $0x38] sm:$0xff]  ;;  %v37_v57 = vld [vmem:[%s2422_s0 + $0x40] sm:$0xff] }
  0x21   :  { %1691 = vmatpush3.msra.mxu0 %v102_v15  ;;  %1828 = vmatpush3.msra.mxu1 %v102_v15  ;;  %v68_v56 = vld [vmem:[%s2422_s0 + $0x138] sm:$0xff]  ;;  %v69_v58 = vld [vmem:[%s2422_s0 + $0x140] sm:$0xff]  ;;  %v519_v59 = vld [vmem:[%s2424_s2 + $0xc8] sm:$0xff] }
  0x22   :  { %1692 = vmatprep.subr.mxu0 %v101_v16  ;;  %1813 = vmatprep.subr.mxu1 %v101_v16  ;;  %v518_v60 = vld [vmem:[%s2424_s2 + $0xc0] sm:$0xff]  ;;  %v38_v61 = vld [vmem:[%s2422_s0 + $0x48] sm:$0xff]  ;;  %v39_v63 = vld [vmem:[%s2422_s0 + $0x50] sm:$0xff] }
  0x23   :  { %1693 = vmatpush3.msra.mxu0 %v101_v16  ;;  %1829 = vmatpush3.msra.mxu1 %v101_v16  ;;  %v70_v62 = vld [vmem:[%s2422_s0 + $0x148] sm:$0xff]  ;;  %v71_v0 = vld [vmem:[%s2422_s0 + $0x150] sm:$0xff]  ;;  %v521_v1 = vld [vmem:[%s2424_s2 + $0xd8] sm:$0xff] }
  0x24   :  { %605 = vperm.xlu1 %1846, %v503_v17   ;;  %600 = vperm.xlu0 %1845, %v502_v18   ;;  %v520_v2 = vld [vmem:[%s2424_s2 + $0xd0] sm:$0xff]  ;;  %v40_v3 = vld [vmem:[%s2422_s0 + $0x58] sm:$0xff]  ;;  %v41_v5 = vld [vmem:[%s2422_s0 + $0x60] sm:$0xff] }
  0x25   :  { %1694 = vmatprep.subr.mxu0 %v100_v19  ;;  %1814 = vmatprep.subr.mxu1 %v100_v19  ;;  %v72_v4 = vld [vmem:[%s2422_s0 + $0x158] sm:$0xff]  ;;  %v73_v6 = vld [vmem:[%s2422_s0 + $0x160] sm:$0xff]  ;;  %v523_v7 = vld [vmem:[%s2424_s2 + $0xe8] sm:$0xff] }
  0x26   :  { %1695 = vmatpush3.msra.mxu0 %v100_v19  ;;  %1830 = vmatpush3.msra.mxu1 %v100_v19  ;;  %v522_v8 = vld [vmem:[%s2424_s2 + $0xe0] sm:$0xff]  ;;  %v42_v9 = vld [vmem:[%s2422_s0 + $0x68] sm:$0xff]  ;;  %v43_v11 = vld [vmem:[%s2422_s0 + $0x70] sm:$0xff] }
  0x27   :  { %1696 = vmatprep.subr.mxu0 %v99_v20  ;;  %1815 = vmatprep.subr.mxu1 %v99_v20  ;;  %v74_v10 = vld [vmem:[%s2422_s0 + $0x168] sm:$0xff]  ;;  %v75_v12 = vld [vmem:[%s2422_s0 + $0x170] sm:$0xff]  ;;  %v525_v13 = vld [vmem:[%s2424_s2 + $0xf8] sm:$0xff] }
  0x28   :  { %1697 = vmatpush3.msra.mxu0 %v99_v20  ;;  %1831 = vmatpush3.msra.mxu1 %v99_v20  ;;  %v524_v14 = vld [vmem:[%s2424_s2 + $0xf0] sm:$0xff]  ;;  %v44_v15 = vld [vmem:[%s2422_s0 + $0x78] sm:$0xff]  ;;  %v45_v17 = vld [vmem:[%s2422_s0 + $0x80] sm:$0xff] }
  0x29   :  { %615 = vperm.xlu1 %1846, %v505_v21   ;;  %610 = vperm.xlu0 %1845, %v504_v22   ;;  %v76_v16 = vld [vmem:[%s2422_s0 + $0x178] sm:$0xff]  ;;  %v77_v18 = vld [vmem:[%s2422_s0 + $0x180] sm:$0xff]  ;;  %v527_v19 = vld [vmem:[%s2424_s2 + $0x108] sm:$0xff] }
  0x2a   :  { %1698 = vmatprep.subr.mxu0 %v98_v23  ;;  %1816 = vmatprep.subr.mxu1 %v98_v23  ;;  %v526_v20 = vld [vmem:[%s2424_s2 + $0x100] sm:$0xff]  ;;  %v46_v21 = vld [vmem:[%s2422_s0 + $0x88] sm:$0xff] }
  0x2b   :  { %1699 = vmatpush3.msra.mxu0 %v98_v23  ;;  %1832 = vmatpush3.msra.mxu1 %v98_v23  ;;  %v78_v22 = vld [vmem:[%s2422_s0 + $0x188] sm:$0xff]  ;;  %v47_v23 = vld [vmem:[%s2422_s0 + $0x90] sm:$0xff] }
  0x2c   :  { %1700 = vmatprep.subr.mxu0 %v97_v24  ;;  %1817 = vmatprep.subr.mxu1 %v97_v24 }
  0x2d   :  { %1701 = vmatpush3.msra.mxu0 %v97_v24  ;;  %1833 = vmatpush3.msra.mxu1 %v97_v24  ;;  %v79_v24 = vld [vmem:[%s2422_s0 + $0x190] sm:$0xff] }
  0x2e   :  { %625 = vperm.xlu1 %1846, %v507_v25   ;;  %620 = vperm.xlu0 %1845, %v506_v26   ;;  %v529_v25 = vld [vmem:[%s2424_s2 + $0x118] sm:$0xff]  ;;  %v528_v26 = vld [vmem:[%s2424_s2 + $0x110] sm:$0xff] }
  0x2f   :  { %1702 = vmatprep.subr.mxu0 %v96_v27  ;;  %1818 = vmatprep.subr.mxu1 %v96_v27 }
  0x30   :  { %1703 = vmatpush3.msra.mxu0 %v96_v27  ;;  %1834 = vmatpush3.msra.mxu1 %v96_v27  ;;  %v48_v27 = vld [vmem:[%s2422_s0 + $0x98] sm:$0xff] }
  0x31   :  { %1704 = vmatprep.subr.mxu0 %v95_v28  ;;  %1819 = vmatprep.subr.mxu1 %v95_v28 }
  0x32   :  { %1705 = vmatpush3.msra.mxu0 %v95_v28  ;;  %1835 = vmatpush3.msra.mxu1 %v95_v28  ;;  %v80_v28 = vld [vmem:[%s2422_s0 + $0x198] sm:$0xff] }
  0x33   :  { %635 = vperm.xlu1 %1846, %v509_v29   ;;  %630 = vperm.xlu0 %1845, %v508_v30   ;;  %v49_v29 = vld [vmem:[%s2422_s0 + $0xa0] sm:$0xff] }
  0x34   :  { %1706 = vmatprep.subr.mxu0 %v94_v31  ;;  %1820 = vmatprep.subr.mxu1 %v94_v31  ;;  %v81_v30 = vld [vmem:[%s2422_s0 + $0x1a0] sm:$0xff] }
  0x35   :  { %1707 = vmatpush3.msra.mxu0 %v94_v31  ;;  %1836 = vmatpush3.msra.mxu1 %v94_v31  ;;  %v531_v31 = vld [vmem:[%s2424_s2 + $0x128] sm:$0xff] }
  0x36   :  { %1708 = vmatprep.subr.mxu0 %v93_v32  ;;  %1821 = vmatprep.subr.mxu1 %v93_v32 }
  0x37   :  { %1709 = vmatpush3.msra.mxu0 %v93_v32  ;;  %1837 = vmatpush3.msra.mxu1 %v93_v32  ;;  %v530_v32 = vld [vmem:[%s2424_s2 + $0x120] sm:$0xff] }
  0x38   :  { %1710 = vmatprep.mubr.f32.mxu0 %v29_v33  ;;  %1758 = vmatprep.mubr.f32.mxu1 %v61_v34  ;;  %v50_v33 = vld [vmem:[%s2422_s0 + $0xa8] sm:$0xff] }
  0x39   :  { %645 = vperm.xlu1 %1846, %v511_v35   ;;  %640 = vperm.xlu0 %1845, %v510_v36   ;;  %v82_v34 = vld [vmem:[%s2422_s0 + $0x1a8] sm:$0xff]  ;;  %v51_v35 = vld [vmem:[%s2422_s0 + $0xb0] sm:$0xff] }
  0x3a   :  { %1711 = vmatmul.mubr.f32.vlgmr.msra.gmra.mxu0 %v30_v37  ;;  %1759 = vmatmul.mubr.f32.vlgmr.msra.gmra.mxu1 %v62_v38  ;;  %v83_v36 = vld [vmem:[%s2422_s0 + $0x1b0] sm:$0xff]  ;;  %v533_v37 = vld [vmem:[%s2424_s2 + $0x138] sm:$0xff] }
  0x3b   :  { %1713 = vmatprep.mubr.f32.mxu0 %v31_v39  ;;  %1761 = vmatprep.mubr.f32.mxu1 %v63_v40  ;;  %v532_v38 = vld [vmem:[%s2424_s2 + $0x130] sm:$0xff]  ;;  %v52_v39 = vld [vmem:[%s2422_s0 + $0xb8] sm:$0xff] }
  0x3c   :  { %v84_v40 = vld [vmem:[%s2422_s0 + $0x1b8] sm:$0xff] }
  0x3d   :  { %655 = vperm.xlu1 %1846, %v513_v41   ;;  %650 = vperm.xlu0 %1845, %v512_v42   ;;  %v53_v41 = vld [vmem:[%s2422_s0 + $0xc0] sm:$0xff] }
  0x3e   :  { %1714 = vmatmul.mubr.f32.gmra.mxu0 %v32_v43  ;;  %1762 = vmatmul.mubr.f32.gmra.mxu1 %v64_v44  ;;  %v85_v42 = vld [vmem:[%s2422_s0 + $0x1c0] sm:$0xff]  ;;  %v535_v43 = vld [vmem:[%s2424_s2 + $0x148] sm:$0xff] }
  0x3f   :  { %1716 = vmatprep.mubr.f32.mxu0 %v33_v45  ;;  %1764 = vmatprep.mubr.f32.mxu1 %v65_v46  ;;  %v534_v44 = vld [vmem:[%s2424_s2 + $0x140] sm:$0xff]  ;;  %v54_v45 = vld [vmem:[%s2422_s0 + $0xc8] sm:$0xff] }
  0x40   :  { %v86_v46 = vld [vmem:[%s2422_s0 + $0x1c8] sm:$0xff] }
  0x41   :  { %665 = vperm.xlu1 %1846, %v515_v47   ;;  %660 = vperm.xlu0 %1845, %v514_v48   ;;  %v55_v47 = vld [vmem:[%s2422_s0 + $0xd0] sm:$0xff] }
  0x42   :  { %1717 = vmatmul.mubr.f32.gmra.mxu0 %v34_v49  ;;  %1765 = vmatmul.mubr.f32.gmra.mxu1 %v66_v50  ;;  %v87_v48 = vld [vmem:[%s2422_s0 + $0x1d0] sm:$0xff]  ;;  %v537_v49 = vld [vmem:[%s2424_s2 + $0x158] sm:$0xff] }
  0x43   :  { %1719 = vmatprep.mubr.f32.mxu0 %v35_v51  ;;  %1767 = vmatprep.mubr.f32.mxu1 %v67_v52  ;;  %v536_v50 = vld [vmem:[%s2424_s2 + $0x150] sm:$0xff]  ;;  %v56_v51 = vld [vmem:[%s2422_s0 + $0xd8] sm:$0xff] }
  0x44   :  { %v88_v52 = vld [vmem:[%s2422_s0 + $0x1d8] sm:$0xff] }
  0x45   :  { %675 = vperm.xlu1 %1846, %v517_v53   ;;  %670 = vperm.xlu0 %1845, %v516_v54   ;;  %v57_v53 = vld [vmem:[%s2422_s0 + $0xe0] sm:$0xff] }
  0x46   :  { %1720 = vmatmul.mubr.f32.gmra.mxu0 %v36_v55  ;;  %1768 = vmatmul.mubr.f32.gmra.mxu1 %v68_v56  ;;  %v89_v54 = vld [vmem:[%s2422_s0 + $0x1e0] sm:$0xff]  ;;  %v539_v55 = vld [vmem:[%s2424_s2 + $0x168] sm:$0xff] }
  0x47   :  { %1722 = vmatprep.mubr.f32.mxu0 %v37_v57  ;;  %1770 = vmatprep.mubr.f32.mxu1 %v69_v58  ;;  %v538_v56 = vld [vmem:[%s2424_s2 + $0x160] sm:$0xff]  ;;  %v58_v57 = vld [vmem:[%s2422_s0 + $0xe8] sm:$0xff] }
  0x48   :  { %v90_v58 = vld [vmem:[%s2422_s0 + $0x1e8] sm:$0xff] }
  0x49   :  { %685 = vperm.xlu1 %1846, %v519_v59   ;;  %680 = vperm.xlu0 %1845, %v518_v60   ;;  %v59_v59 = vld [vmem:[%s2422_s0 + $0xf0] sm:$0xff] }
  0x4a   :  { %1723 = vmatmul.mubr.f32.gmra.mxu0 %v38_v61  ;;  %1771 = vmatmul.mubr.f32.gmra.mxu1 %v70_v62  ;;  %v91_v60 = vld [vmem:[%s2422_s0 + $0x1f0] sm:$0xff]  ;;  %v541_v61 = vld [vmem:[%s2424_s2 + $0x178] sm:$0xff] }
  0x4b   :  { %1725 = vmatprep.mubr.f32.mxu0 %v39_v63  ;;  %1773 = vmatprep.mubr.f32.mxu1 %v71_v0  ;;  %v540_v62 = vld [vmem:[%s2424_s2 + $0x170] sm:$0xff]  ;;  %v60_v63 = vld [vmem:[%s2422_s0 + $0xf8] sm:$0xff] }
  0x4c   :  { %v92_v0 = vld [vmem:[%s2422_s0 + $0x1f8] sm:$0xff] }
  0x4d   :  { %695 = vperm.xlu1 %1846, %v521_v1   ;;  %690 = vperm.xlu0 %1845, %v520_v2   ;;  %v543_v1 = vld [vmem:[%s2424_s2 + $0x188] sm:$0xff]  ;;  %v542_v2 = vld [vmem:[%s2424_s2 + $0x180] sm:$0xff] }
  0x4e   :  { %1726 = vmatmul.mubr.f32.gmra.mxu0 %v40_v3  ;;  %1774 = vmatmul.mubr.f32.gmra.mxu1 %v72_v4  ;;  %v545_v3 = vld [vmem:[%s2424_s2 + $0x198] sm:$0xff]  ;;  %v544_v4 = vld [vmem:[%s2424_s2 + $0x190] sm:$0xff] }
  0x4f   :  { %1728 = vmatprep.mubr.f32.mxu0 %v41_v5  ;;  %1776 = vmatprep.mubr.f32.mxu1 %v73_v6  ;;  %v547_v5 = vld [vmem:[%s2424_s2 + $0x1a8] sm:$0xff]  ;;  %v546_v6 = vld [vmem:[%s2424_s2 + $0x1a0] sm:$0xff] }
  0x51   :  { %705 = vperm.xlu1 %1846, %v523_v7   ;;  %700 = vperm.xlu0 %1845, %v522_v8   ;;  %v549_v7 = vld [vmem:[%s2424_s2 + $0x1b8] sm:$0xff]  ;;  %v548_v8 = vld [vmem:[%s2424_s2 + $0x1b0] sm:$0xff] }
  0x52   :  { %1729 = vmatmul.mubr.f32.gmra.mxu0 %v42_v9  ;;  %1777 = vmatmul.mubr.f32.gmra.mxu1 %v74_v10  ;;  %v551_v9 = vld [vmem:[%s2424_s2 + $0x1c8] sm:$0xff]  ;;  %v550_v10 = vld [vmem:[%s2424_s2 + $0x1c0] sm:$0xff] }
  0x53   :  { %1731 = vmatprep.mubr.f32.mxu0 %v43_v11  ;;  %1779 = vmatprep.mubr.f32.mxu1 %v75_v12  ;;  %v553_v11 = vld [vmem:[%s2424_s2 + $0x1d8] sm:$0xff]  ;;  %v552_v12 = vld [vmem:[%s2424_s2 + $0x1d0] sm:$0xff] }
  0x55   :  { %715 = vperm.xlu1 %1846, %v525_v13   ;;  %710 = vperm.xlu0 %1845, %v524_v14  }
  0x56   :  { %1732 = vmatmul.mubr.f32.gmra.mxu0 %v44_v15  ;;  %1780 = vmatmul.mubr.f32.gmra.mxu1 %v76_v16  ;;  %v555_v15 = vld [vmem:[%s2424_s2 + $0x1e8] sm:$0xff]  ;;  %v554_v16 = vld [vmem:[%s2424_s2 + $0x1e0] sm:$0xff] }
  0x57   :  { %1734 = vmatprep.mubr.f32.mxu0 %v45_v17  ;;  %1782 = vmatprep.mubr.f32.mxu1 %v77_v18 }
  0x59   :  { %725 = vperm.xlu1 %1846, %v527_v19   ;;  %720 = vperm.xlu0 %1845, %v526_v20   ;;  %v557_v19 = vld [vmem:[%s2424_s2 + $0x1f8] sm:$0xff]  ;;  %v556_v20 = vld [vmem:[%s2424_s2 + $0x1f0] sm:$0xff]  ;;  %s1895_s2 = smov [#allocation5]  }
  0x5a   :  { %1735 = vmatmul.mubr.f32.gmra.mxu0 %v46_v21  ;;  %1783 = vmatmul.mubr.f32.gmra.mxu1 %v78_v22  ;;  %s1267_s22 = sshll.u32 %s1895_s2, 4  ;;  %s1268_s22 = int_to_ptr.vmem [resolvable:$true] %s1267_s22 }
  0x5b   :  { %1737 = vmatprep.mubr.f32.mxu0 %v47_v23  ;;  %1785 = vmatprep.mubr.f32.mxu1 %v79_v24  ;;  %s1867_s1 = scalar_lea.vmem %s1268_s22, 4096  ;;  %p1872_p6 = scmp.lt.s32.totalorder %s1268_s22, %s1268_s22 }
  0x5c   :  { %p1868_p5 = scmp.ne.s32.totalorder %s1268_s22, %s1867_s1  ;;  %p1873_p7 = scmp.lt.s32.totalorder %s1867_s1, %s1867_s1 }
  0x5d   :  { %735 = vperm.xlu1 %1846, %v529_v25   ;;  %730 = vperm.xlu0 %1845, %v528_v26  }
  0x5e   :  { %1738 = vmatmul.mubr.f32.gmra.mxu0 %v48_v27  ;;  %1786 = vmatmul.mubr.f32.gmra.mxu1 %v80_v28  ;;  %p1874_p8 = por %p1873_p7, %p1872_p6 }
  0x5f   :  { %1740 = vmatprep.mubr.f32.mxu0 %v49_v29  ;;  %1788 = vmatprep.mubr.f32.mxu1 %v81_v30 }
  0x60   :  { %p1875_p9 = pnand %p1874_p8, %p1868_p5 }
  0x61   :  { %745 = vperm.xlu1 %1846, %v531_v31   ;;  %740 = vperm.xlu0 %1845, %v530_v32  }
  0x62   :  { %1741 = vmatmul.mubr.f32.gmra.mxu0 %v50_v33  ;;  %1789 = vmatmul.mubr.f32.gmra.mxu1 %v82_v34 }
  0x63   :  { %1743 = vmatprep.mubr.f32.mxu0 %v51_v35  ;;  %1791 = vmatprep.mubr.f32.mxu1 %v83_v36 }
  0x65   :  { %755 = vperm.xlu1 %1846, %v533_v37   ;;  %750 = vperm.xlu0 %1845, %v532_v38  }
  0x66   :  { %1744 = vmatmul.mubr.f32.gmra.mxu0 %v52_v39  ;;  %1792 = vmatmul.mubr.f32.gmra.mxu1 %v84_v40 }
  0x67   :  { %1746 = vmatprep.mubr.f32.mxu0 %v53_v41  ;;  %1794 = vmatprep.mubr.f32.mxu1 %v85_v42 }
  0x69   :  { %765 = vperm.xlu1 %1846, %v535_v43   ;;  %760 = vperm.xlu0 %1845, %v534_v44  }
  0x6a   :  { %1747 = vmatmul.mubr.f32.gmra.mxu0 %v54_v45  ;;  %1795 = vmatmul.mubr.f32.gmra.mxu1 %v86_v46 }
  0x6b   :  { %1749 = vmatprep.mubr.f32.mxu0 %v55_v47  ;;  %1797 = vmatprep.mubr.f32.mxu1 %v87_v48 }
  0x6d   :  { %775 = vperm.xlu1 %1846, %v537_v49   ;;  %770 = vperm.xlu0 %1845, %v536_v50  }
  0x6e   :  { %1750 = vmatmul.mubr.f32.gmra.mxu0 %v56_v51  ;;  %1798 = vmatmul.mubr.f32.gmra.mxu1 %v88_v52 }
  0x6f   :  { %1752 = vmatprep.mubr.f32.mxu0 %v57_v53  ;;  %1800 = vmatprep.mubr.f32.mxu1 %v89_v54 }
  0x71   :  { %785 = vperm.xlu1 %1846, %v539_v55   ;;  %780 = vperm.xlu0 %1845, %v538_v56  }
  0x72   :  { %1753 = vmatmul.mubr.f32.gmra.mxu0 %v58_v57  ;;  %1801 = vmatmul.mubr.f32.gmra.mxu1 %v90_v58 }
  0x73   :  { %1755 = vmatprep.mubr.f32.mxu0 %v59_v59  ;;  %1803 = vmatprep.mubr.f32.mxu1 %v91_v60 }
  0x75   :  { %795 = vperm.xlu1 %1846, %v541_v61   ;;  %790 = vperm.xlu0 %1845, %v540_v62  }
  0x76   :  { %1756 = vmatmul.mubr.f32.gmra.mxu0 %v60_v63  ;;  %1804 = vmatmul.mubr.f32.gmra.mxu1 %v92_v0 }
  0x79   :  { %805 = vperm.xlu1 %1846, %v543_v1   ;;  %800 = vperm.xlu0 %1845, %v542_v2  }
  0x7d   :  { %815 = vperm.xlu1 %1846, %v545_v3   ;;  %810 = vperm.xlu0 %1845, %v544_v4  }
  0x81   :  { %825 = vperm.xlu1 %1846, %v547_v5   ;;  %820 = vperm.xlu0 %1845, %v546_v6  }
  0x85   :  { %835 = vperm.xlu1 %1846, %v549_v7   ;;  %830 = vperm.xlu0 %1845, %v548_v8  }
  0x89   :  { %845 = vperm.xlu1 %1846, %v551_v9   ;;  %840 = vperm.xlu0 %1845, %v550_v10  }
  0x8b   :  { %v2293_v13 = vpop.permute.xlu1 %570  ;;  %v561_v14 = vpop.permute.xlu0 %560 }
  0x8d   :  { %855 = vperm.xlu1 %1846, %v553_v11   ;;  %850 = vperm.xlu0 %1845, %v552_v12  }
  0x90   :  { %v2301_v17 = vpop.permute.xlu1 %575  ;;  %v566_v18 = vpop.permute.xlu0 %565 }
  0x91   :  { %865 = vperm.xlu1 %1846, %v555_v15   ;;  %860 = vperm.xlu0 %1845, %v554_v16  }
  0x95   :  { %875 = vperm.xlu1 %1846, %v557_v19   ;;  %870 = vperm.xlu0 %1845, %v556_v20   ;;  %v2309_v21 = vpop.permute.xlu1 %585  ;;  %v2311_v22 = vpop.permute.xlu0 %580 }
  0x9a   :  { %v2313_v23 = vpop.permute.xlu1 %595  ;;  %v2315_v24 = vpop.permute.xlu0 %590 }
  0x9f   :  { %v2317_v25 = vpop.permute.xlu1 %605  ;;  %v2319_v26 = vpop.permute.xlu0 %600 }
  0xa4   :  { %v2321_v27 = vpop.permute.xlu1 %615  ;;  %v2323_v28 = vpop.permute.xlu0 %610 }
  0xa9   :  { %v2325_v29 = vpop.permute.xlu1 %625  ;;  %v2327_v30 = vpop.permute.xlu0 %620 }
  0xae   :  { %v2329_v31 = vpop.permute.xlu1 %635  ;;  %v2331_v32 = vpop.permute.xlu0 %630 }
  0xb4   :  { %v2333_v33 = vpop.permute.xlu1 %645  ;;  %v2335_v34 = vpop.permute.xlu0 %640 }
  0xb8   :  { %v2337_v35 = vpop.permute.xlu1 %655  ;;  %v2339_v36 = vpop.permute.xlu0 %650 }
  0xbc   :  { %v2341_v37 = vpop.permute.xlu1 %665  ;;  %v2343_v38 = vpop.permute.xlu0 %660 }
  0xc0   :  { %v2345_v39 = vpop.permute.xlu1 %675  ;;  %v2347_v40 = vpop.permute.xlu0 %670 }
  0xc4   :  { %v2349_v41 = vpop.permute.xlu1 %685  ;;  %v2351_v42 = vpop.permute.xlu0 %680 }
  0xc8   :  { %v2353_v43 = vpop.permute.xlu1 %695  ;;  %v2355_v44 = vpop.permute.xlu0 %690 }
  0xcc   :  { %v2357_v45 = vpop.permute.xlu1 %705  ;;  %v2359_v46 = vpop.permute.xlu0 %700 }
  0xd0   :  { %v2361_v47 = vpop.permute.xlu1 %715  ;;  %v2363_v48 = vpop.permute.xlu0 %710 }
  0xd4   :  { %v726_v49 = vpop.permute.xlu1 %725  ;;  %v721_v50 = vpop.permute.xlu0 %720 }
  0xd8   :  { %v736_v51 = vpop.permute.xlu1 %735  ;;  %v731_v52 = vpop.permute.xlu0 %730 }
  0xdc   :  { %v746_v53 = vpop.permute.xlu1 %745  ;;  %v741_v54 = vpop.permute.xlu0 %740 }
  0xe0   :  { %v756_v55 = vpop.permute.xlu1 %755  ;;  %v751_v56 = vpop.permute.xlu0 %750 }
  0xe4   :  { %v2365_v57 = vpop.permute.xlu1 %765  ;;  %v2367_v58 = vpop.permute.xlu0 %760 }
  0xe8   :  { %v2369_v61 = vpop.permute.xlu1 %775  ;;  %v2371_v62 = vpop.permute.xlu0 %770 }
  0xec   :  { %v2373_v11 = vpop.permute.xlu1 %785  ;;  %v2375_v12 = vpop.permute.xlu0 %780 }
  0xfa   :  { %v1712_v59 = vpop.f32.mrf.mxu0  ;;  %v1760_v60 = vpop.f32.mrf.mxu1 }
  0xfb   :  { %v879_v1 = vmul.f32 %v1712_v59, %v566_v18  ;;  %v911_v2 = vmul.f32 %v1760_v60, %v726_v49 }
  0xfc   :  { %v175_v63 = vpop.f32.mrf.mxu0  ;;  %v335_v0 = vpop.f32.mrf.mxu1 }
  0xfd   :  { %v878_v3 = vmul.f32 %v561_v14, %v175_v63  ;;  %v910_v4 = vmul.f32 %v721_v50, %v335_v0 }
  0xfe   :  { %v1715_v5 = vpop.f32.mrf.mxu0  ;;  %v1763_v6 = vpop.f32.mrf.mxu1 }
  0xff   :  { %v1410_v7 = vpack.c.bf16 %v879_v1, %v878_v3  ;;  %v1490_v8 = vpack.c.bf16 %v911_v2, %v910_v4  ;;  %v881_v15 = vmul.f32 %v1715_v5, %v2301_v17  ;;  %v913_v16 = vmul.f32 %v1763_v6, %v736_v51  ;;  %v2381_v51 = vpop.permute.xlu1 %795 }
 0x100   :  { %v185_v9 = vpop.f32.mrf.mxu0  ;;  %v345_v10 = vpop.f32.mrf.mxu1 }
 0x101   :  { %1411 = vst [vmem:[#allocation5] sm:$0xff] %v1410_v7   ;;  %1582 = vst [vmem:[#allocation5 + $0x80] sm:$0xff] %v1490_v8   ;;  %v880_v18 = vmul.f32 %v2293_v13, %v185_v9  ;;  %v912_v19 = vmul.f32 %v731_v52, %v345_v10  ;;  %v2383_v13 = vpop.permute.xlu0 %790 }
 0x102   :  { %v1718_v14 = vpop.f32.mrf.mxu0  ;;  %v1766_v20 = vpop.f32.mrf.mxu1 }
 0x103   :  { %v1415_v49 = vpack.c.bf16 %v881_v15, %v880_v18  ;;  %v1495_v50 = vpack.c.bf16 %v913_v16, %v912_v19  ;;  %v883_v63 = vmul.f32 %v1718_v14, %v2309_v21  ;;  %v915_v0 = vmul.f32 %v1766_v20, %v746_v53  ;;  %v806_v18 = vpop.permute.xlu1 %805 }
 0x104   :  { %v195_v59 = vpop.f32.mrf.mxu0  ;;  %v355_v60 = vpop.f32.mrf.mxu1 }
 0x105   :  { %1567 = vst [vmem:[#allocation5 + $0x8] sm:$0xff] %v1415_v49   ;;  %1583 = vst [vmem:[#allocation5 + $0x88] sm:$0xff] %v1495_v50   ;;  %v882_v1 = vmul.f32 %v2311_v22, %v195_v59  ;;  %v914_v2 = vmul.f32 %v741_v54, %v355_v60  ;;  %v801_v19 = vpop.permute.xlu0 %800 }
 0x106   :  { %v1721_v3 = vpop.f32.mrf.mxu0  ;;  %v1769_v17 = vpop.f32.mrf.mxu1 }
 0x107   :  { %v1420_v52 = vpack.c.bf16 %v883_v63, %v882_v1  ;;  %v1500_v4 = vpack.c.bf16 %v915_v0, %v914_v2  ;;  %v885_v7 = vmul.f32 %v1721_v3, %v2313_v23  ;;  %v917_v8 = vmul.f32 %v1769_v17, %v756_v55  ;;  %v816_v2 = vpop.permute.xlu1 %815 }
 0x108   :  { %v205_v5 = vpop.f32.mrf.mxu0  ;;  %v365_v6 = vpop.f32.mrf.mxu1 }
 0x109   :  { %1568 = vst [vmem:[#allocation5 + $0x10] sm:$0xff] %v1420_v52   ;;  %1584 = vst [vmem:[#allocation5 + $0x90] sm:$0xff] %v1500_v4   ;;  %v884_v21 = vmul.f32 %v2315_v24, %v205_v5  ;;  %v916_v53 = vmul.f32 %v751_v56, %v365_v6 }
 0x10a   :  { %v1724_v22 = vpop.f32.mrf.mxu0  ;;  %v1772_v54 = vpop.f32.mrf.mxu1 }
 0x10b   :  { %v1425_v9 = vpack.c.bf16 %v885_v7, %v884_v21  ;;  %v1505_v10 = vpack.c.bf16 %v917_v8, %v916_v53  ;;  %v887_v14 = vmul.f32 %v1724_v22, %v2317_v25  ;;  %v919_v20 = vmul.f32 %v1772_v54, %v2365_v57  ;;  %v826_v22 = vpop.permute.xlu1 %825 }
 0x10c   :  { %v215_v15 = vpop.f32.mrf.mxu0  ;;  %v375_v16 = vpop.f32.mrf.mxu1 }
 0x10d   :  { %1569 = vst [vmem:[#allocation5 + $0x18] sm:$0xff] %v1425_v9   ;;  %1585 = vst [vmem:[#allocation5 + $0x98] sm:$0xff] %v1505_v10   ;;  %v886_v23 = vmul.f32 %v2319_v26, %v215_v15  ;;  %v918_v55 = vmul.f32 %v2367_v58, %v375_v16  ;;  %v811_v58 = vpop.permute.xlu0 %810 }
 0x10e   :  { %v1727_v24 = vpop.f32.mrf.mxu0  ;;  %v1775_v56 = vpop.f32.mrf.mxu1 }
 0x10f   :  { %v1430_v49 = vpack.c.bf16 %v887_v14, %v886_v23  ;;  %v1510_v50 = vpack.c.bf16 %v919_v20, %v918_v55  ;;  %v889_v63 = vmul.f32 %v1727_v24, %v2321_v27  ;;  %v921_v0 = vmul.f32 %v1775_v56, %v2369_v61 }
 0x110   :  { %v225_v59 = vpop.f32.mrf.mxu0  ;;  %v385_v60 = vpop.f32.mrf.mxu1 }
 0x111   :  { %1570 = vst [vmem:[#allocation5 + $0x20] sm:$0xff] %v1430_v49   ;;  %1586 = vst [vmem:[#allocation5 + $0xa0] sm:$0xff] %v1510_v50   ;;  %v888_v25 = vmul.f32 %v2323_v28, %v225_v59  ;;  %v920_v57 = vmul.f32 %v2371_v62, %v385_v60  ;;  %v821_v54 = vpop.permute.xlu0 %820  ;;  %v836_v49 = vpop.permute.xlu1 %835 }
 0x112   :  { %v1730_v1 = vpop.f32.mrf.mxu0  ;;  %v1778_v26 = vpop.f32.mrf.mxu1 }
 0x113   :  { %v1435_v3 = vpack.c.bf16 %v889_v63, %v888_v25  ;;  %v1515_v17 = vpack.c.bf16 %v921_v0, %v920_v57  ;;  %v891_v5 = vmul.f32 %v1730_v1, %v2325_v29  ;;  %v923_v27 = vmul.f32 %v1778_v26, %v2373_v11 }
 0x114   :  { %v235_v52 = vpop.f32.mrf.mxu0  ;;  %v395_v4 = vpop.f32.mrf.mxu1 }
 0x115   :  { %1571 = vst [vmem:[#allocation5 + $0x28] sm:$0xff] %v1435_v3   ;;  %1587 = vst [vmem:[#allocation5 + $0xa8] sm:$0xff] %v1515_v17   ;;  %v890_v61 = vmul.f32 %v2327_v30, %v235_v52  ;;  %v922_v28 = vmul.f32 %v2375_v12, %v395_v4  ;;  %v846_v3 = vpop.permute.xlu1 %845 }
 0x116   :  { %v1733_v6 = vpop.f32.mrf.mxu0  ;;  %v1781_v62 = vpop.f32.mrf.mxu1 }
 0x117   :  { %v1440_v7 = vpack.c.bf16 %v891_v5, %v890_v61  ;;  %v1520_v8 = vpack.c.bf16 %v923_v27, %v922_v28  ;;  %v893_v9 = vmul.f32 %v1733_v6, %v2329_v31  ;;  %v925_v29 = vmul.f32 %v1781_v62, %v2381_v51 }
 0x118   :  { %v245_v21 = vpop.f32.mrf.mxu0  ;;  %v405_v53 = vpop.f32.mrf.mxu1 }
 0x119   :  { %1572 = vst [vmem:[#allocation5 + $0x30] sm:$0xff] %v1440_v7   ;;  %1588 = vst [vmem:[#allocation5 + $0xb0] sm:$0xff] %v1520_v8   ;;  %v892_v11 = vmul.f32 %v2331_v32, %v245_v21  ;;  %v924_v30 = vmul.f32 %v2383_v13, %v405_v53  ;;  %v831_v32 = vpop.permute.xlu0 %830  ;;  %v856_v53 = vpop.permute.xlu1 %855 }
 0x11a   :  { %v1736_v10 = vpop.f32.mrf.mxu0  ;;  %v1784_v12 = vpop.f32.mrf.mxu1 }
 0x11b   :  { %v1445_v15 = vpack.c.bf16 %v893_v9, %v892_v11  ;;  %v1525_v16 = vpack.c.bf16 %v925_v29, %v924_v30  ;;  %v895_v23 = vmul.f32 %v1736_v10, %v2333_v33  ;;  %v927_v55 = vmul.f32 %v1784_v12, %v806_v18 }
 0x11c   :  { %v255_v14 = vpop.f32.mrf.mxu0  ;;  %v415_v20 = vpop.f32.mrf.mxu1 }
 0x11d   :  { %1573 = vst [vmem:[#allocation5 + $0x38] sm:$0xff] %v1445_v15   ;;  %1589 = vst [vmem:[#allocation5 + $0xb8] sm:$0xff] %v1525_v16   ;;  %v894_v24 = vmul.f32 %v2335_v34, %v255_v14  ;;  %v926_v31 = vmul.f32 %v801_v19, %v415_v20  ;;  %v841_v17 = vpop.permute.xlu0 %840 }
 0x11e   :  { %v1739_v56 = vpop.f32.mrf.mxu0  ;;  %v1787_v51 = vpop.f32.mrf.mxu1 }
 0x11f   :  { %v1450_v50 = vpack.c.bf16 %v895_v23, %v894_v24  ;;  %v1530_v13 = vpack.c.bf16 %v927_v55, %v926_v31  ;;  %v897_v63 = vmul.f32 %v1739_v56, %v2337_v35  ;;  %v929_v0 = vmul.f32 %v1787_v51, %v816_v2  ;;  %v866_v23 = vpop.permute.xlu1 %865 }
 0x120   :  { %v265_v59 = vpop.f32.mrf.mxu0  ;;  %v425_v60 = vpop.f32.mrf.mxu1 }
 0x121   :  { %1574 = vst [vmem:[#allocation5 + $0x40] sm:$0xff] %v1450_v50   ;;  %1590 = vst [vmem:[#allocation5 + $0xc0] sm:$0xff] %v1530_v13   ;;  %v896_v25 = vmul.f32 %v2339_v36, %v265_v59  ;;  %v928_v33 = vmul.f32 %v811_v58, %v425_v60 }
 0x122   :  { %v1742_v18 = vpop.f32.mrf.mxu0  ;;  %v1790_v57 = vpop.f32.mrf.mxu1 }
 0x123   :  { %v1455_v34 = vpack.c.bf16 %v897_v63, %v896_v25  ;;  %v1535_v19 = vpack.c.bf16 %v929_v0, %v928_v33  ;;  %v899_v52 = vmul.f32 %v1742_v18, %v2341_v37  ;;  %v931_v4 = vmul.f32 %v1790_v57, %v826_v22  ;;  %v851_v22 = vpop.permute.xlu0 %850  ;;  %v876_v33 = vpop.permute.xlu1 %875 }
 0x124   :  { %v275_v1 = vpop.f32.mrf.mxu0  ;;  %v435_v26 = vpop.f32.mrf.mxu1 }
 0x125   :  { %1575 = vst [vmem:[#allocation5 + $0x48] sm:$0xff] %v1455_v34   ;;  %1591 = vst [vmem:[#allocation5 + $0xc8] sm:$0xff] %v1535_v19   ;;  %v898_v5 = vmul.f32 %v2343_v38, %v275_v1  ;;  %v930_v35 = vmul.f32 %v821_v54, %v435_v26 }
 0x126   :  { %v1745_v2 = vpop.f32.mrf.mxu0  ;;  %v1793_v27 = vpop.f32.mrf.mxu1 }
 0x127   :  { %v1460_v36 = vpack.c.bf16 %v899_v52, %v898_v5  ;;  %v1540_v58 = vpack.c.bf16 %v931_v4, %v930_v35  ;;  %v901_v6 = vmul.f32 %v1745_v2, %v2345_v39  ;;  %v933_v62 = vmul.f32 %v1793_v27, %v836_v49  ;;  %v861_v55 = vpop.permute.xlu0 %860 }
 0x128   :  { %v285_v61 = vpop.f32.mrf.mxu0  ;;  %v445_v28 = vpop.f32.mrf.mxu1 }
 0x129   :  { %1576 = vst [vmem:[#allocation5 + $0x50] sm:$0xff] %v1460_v36   ;;  %1592 = vst [vmem:[#allocation5 + $0xd0] sm:$0xff] %v1540_v58   ;;  %v900_v7 = vmul.f32 %v2347_v40, %v285_v61  ;;  %v932_v8 = vmul.f32 %v831_v32, %v445_v28 }
 0x12a   :  { %v1748_v21 = vpop.f32.mrf.mxu0  ;;  %v1796_v37 = vpop.f32.mrf.mxu1 }
 0x12b   :  { %v1465_v38 = vpack.c.bf16 %v901_v6, %v900_v7  ;;  %v1545_v54 = vpack.c.bf16 %v933_v62, %v932_v8  ;;  %v903_v11 = vmul.f32 %v1748_v21, %v2349_v41  ;;  %v935_v30 = vmul.f32 %v1796_v37, %v846_v3  ;;  %v871_v18 = vpop.permute.xlu0 %870 }
 0x12c   :  { %v295_v9 = vpop.f32.mrf.mxu0  ;;  %v455_v29 = vpop.f32.mrf.mxu1 }
 0x12d   :  { %1577 = vst [vmem:[#allocation5 + $0x58] sm:$0xff] %v1465_v38   ;;  %1593 = vst [vmem:[#allocation5 + $0xd8] sm:$0xff] %v1545_v54   ;;  %v902_v10 = vmul.f32 %v2351_v42, %v295_v9  ;;  %v934_v39 = vmul.f32 %v841_v17, %v455_v29 }
 0x12e   :  { %v1751_v12 = vpop.f32.mrf.mxu0  ;;  %v1799_v15 = vpop.f32.mrf.mxu1 }
 0x12f   :  { %v1470_v40 = vpack.c.bf16 %v903_v11, %v902_v10  ;;  %v1550_v16 = vpack.c.bf16 %v935_v30, %v934_v39  ;;  %v905_v24 = vmul.f32 %v1751_v12, %v2353_v43  ;;  %v937_v31 = vmul.f32 %v1799_v15, %v856_v53 }
 0x130   :  { %v305_v14 = vpop.f32.mrf.mxu0  ;;  %v465_v20 = vpop.f32.mrf.mxu1 }
 0x131   :  { %1578 = vst [vmem:[#allocation5 + $0x60] sm:$0xff] %v1470_v40   ;;  %1594 = vst [vmem:[#allocation5 + $0xe0] sm:$0xff] %v1550_v16   ;;  %v904_v56 = vmul.f32 %v2355_v44, %v305_v14  ;;  %v936_v41 = vmul.f32 %v851_v22, %v465_v20 }
 0x132   :  { %v1754_v51 = vpop.f32.mrf.mxu0  ;;  %v1802_v49 = vpop.f32.mrf.mxu1 }
 0x133   :  { %v1475_v42 = vpack.c.bf16 %v905_v24, %v904_v56  ;;  %v1555_v32 = vpack.c.bf16 %v937_v31, %v936_v41  ;;  %v907_v59 = vmul.f32 %v1754_v51, %v2357_v45  ;;  %v939_v60 = vmul.f32 %v1802_v49, %v866_v23 }
 0x134   :  { %v315_v50 = vpop.f32.mrf.mxu0  ;;  %v475_v13 = vpop.f32.mrf.mxu1 }
 0x135   :  { %1579 = vst [vmem:[#allocation5 + $0x68] sm:$0xff] %v1475_v42   ;;  %1595 = vst [vmem:[#allocation5 + $0xe8] sm:$0xff] %v1555_v32   ;;  %v906_v63 = vmul.f32 %v2359_v46, %v315_v50  ;;  %v938_v0 = vmul.f32 %v861_v55, %v475_v13 }
 0x136   :  { %v1757_v25 = vpop.f32.mrf.mxu0  ;;  %v1805_v43 = vpop.f32.mrf.mxu1 }
 0x137   :  { %v1480_v44 = vpack.c.bf16 %v907_v59, %v906_v63  ;;  %v1560_v57 = vpack.c.bf16 %v939_v60, %v938_v0  ;;  %v909_v1 = vmul.f32 %v1757_v25, %v2361_v47  ;;  %v941_v26 = vmul.f32 %v1805_v43, %v876_v33 }
 0x138   :  { %v325_v34 = vpop.f32.mrf.mxu0  ;;  %v485_v19 = vpop.f32.mrf.mxu1 }
 0x139   :  { %1580 = vst [vmem:[#allocation5 + $0x70] sm:$0xff] %v1480_v44   ;;  %1596 = vst [vmem:[#allocation5 + $0xf0] sm:$0xff] %v1560_v57   ;;  %v908_v45 = vmul.f32 %v2363_v48, %v325_v34  ;;  %v940_v3 = vmul.f32 %v871_v18, %v485_v19 }
 0x13b   :  { %v1485_v46 = vpack.c.bf16 %v909_v1, %v908_v45  ;;  %v1565_v17 = vpack.c.bf16 %v941_v26, %v940_v3 }
 0x13d   :  { %1581 = vst [vmem:[#allocation5 + $0x78] sm:$0xff] %v1485_v46   ;;  %1597 = vst [vmem:[#allocation5 + $0xf8] sm:$0xff] %v1565_v17  }
 0x13e   :  { %1878 = shalt.err (!%p1875_p9)
}
 0x13f   :  { %s1896_s23 = smov 64   ;;  %s1897_s24 = smov 4  }
 0x140   :  { %1273 = dma.vmem_to_hbm [thread:$0]  %s1268_s22, 4096, %s2425_s3, [#allocation4], %s1896_s23, %s1896_s23, %s1897_s24  }
 0x141   :  { %1889 = dma.done.wait [#allocation4], 4096  }
 0x142   :  { %1890 = vsyncadd [#allocation4], 4294963200 }
 0x143   :  { %1277 = vsyncpa [#allocation3], 1 }
 0x144   :  { %1278 = vsyncpa [#allocation4], 1 }

</bundles_post_ra>
